<compile_context>
chip_gen: v7x
topology: tpu7x:2x2x1
jax: 0.10.0
libtpu: 0.0.40
codegen_flags: <defaults>
</compile_context>

<pallas_src>
import jax
import jax.numpy as jnp
from jax.experimental import pallas as pl
from jax.experimental.pallas import tpu as pltpu


_MAX_LANES = 2048                 # lane-dense last-dim cap (multiple of 128)
_MIN_PALLAS_BYTES = 1 << 20       # below this, plain jnp beats kernel launch cost


def _lane_dense_layout(n):
    """Pick a lane-dense (rows, lanes, padded_n) 2-D view of n flat elements.

    lanes is always a multiple of 128 (unmasked stores, contiguous DMA) and at
    most _MAX_LANES (bounds the minimum block size).  If n is not a multiple
    of 128 the caller pads the flat array up to padded_n.
    """
    if n % 128 == 0:
        lanes = 128
        cand = _MAX_LANES
        while cand >= 128:
            if n % cand == 0:
                lanes = cand
                break
            cand -= 128
        return n // lanes, lanes, n
    lanes = 128
    padded = ((n + lanes - 1) // lanes) * lanes
    return padded // lanes, lanes, padded


def _vmem_budget():
    """(per-buffer tile bytes, vmem_limit_bytes), generation-aware."""
    tile_bytes = 4 * 1024 * 1024          # safe on v7x (64 MiB VMEM / TC)
    vmem_limit = 48 * 1024 * 1024
    try:
        cap = getattr(pltpu.get_tpu_info(), "vmem_capacity_bytes", None)
        if cap is not None and cap >= 96 * 1024 * 1024:   # v5e / v6e: 128 MiB
            tile_bytes = 8 * 1024 * 1024
            vmem_limit = 64 * 1024 * 1024
    except Exception:
        pass                              # off-TPU / interpret: keep safe defaults
    return tile_bytes, vmem_limit


def _choose_tile_rows(rows, lanes, itemsize, pack, tile_bytes):
    """Largest row tile within the VMEM budget; multiple of the sublane pack,
    prefers an exact divisor of rows, and leaves >= 2 grid blocks when possible
    so the 'parallel' axis can split across v7x's two TensorCores."""
    budget = max(pack, tile_bytes // max(1, lanes * itemsize))
    if rows <= pack or (rows <= budget and rows < 2 * pack):
        return rows                        # full-array block
    tile_r = min(rows, budget)
    if rows >= 2 * pack:                   # guarantee >= 2 blocks (megacore)
        tile_r = min(tile_r, max(pack, (rows // 2 // pack) * pack))
    tile_r = max(pack, (tile_r // pack) * pack)
    if tile_r >= rows:
        return rows
    if rows % tile_r != 0:                 # prefer a divisor -> no ragged tail
        cand = tile_r
        lo = max(pack, tile_r - 4 * pack)
        while cand >= lo:
            if rows % cand == 0:
                return cand
            cand -= pack
    return tile_r


def _ema_kernel(scale_ref, x_ref, feat_ref, out_ref):
    """features_new = decay*f + (1-decay)*x, computed as f + (1-decay)*(x-f).

    scale_ref holds (1 - decay) as an SMEM f32 scalar (single compiled kernel
    across decay values; one sld, invisible under the HBM-bound stream).
    f32 accumulation; single-mul form saves a vmul (free filler anyway).
    """
    one_minus = scale_ref[0]
    x = x_ref[...].astype(jnp.float32)
    f = feat_ref[...].astype(jnp.float32)
    out_ref[...] = (f + one_minus * (x - f)).astype(out_ref.dtype)


def _ema_pallas(x, features, decay_rate):
    orig_shape = x.shape
    n = x.size
    rows, lanes, padded_n = _lane_dense_layout(n)

    xf = x.reshape(-1)
    ff = features.reshape(-1)
    if padded_n != n:                      # pad to a lane-dense slab (unmasked stores)
        pad = padded_n - n
        xf = jnp.pad(xf, (0, pad))
        ff = jnp.pad(ff, (0, pad))
    x2 = xf.reshape(rows, lanes)
    f2 = ff.reshape(rows, lanes)

    x_item = jnp.dtype(x.dtype).itemsize
    f_item = jnp.dtype(features.dtype).itemsize
    itemsize = max(x_item, f_item)
    pack = max(8, 32 // min(x_item, f_item))     # 8 f32 / 16 bf16 / 32 int8-fp8

    tile_bytes, vmem_limit = _vmem_budget()
    tile_r = _choose_tile_rows(rows, lanes, itemsize, pack, tile_bytes)

    grid = (pl.cdiv(rows, tile_r),)
    blk = pl.BlockSpec((tile_r, lanes), lambda i: (i, 0))
    scalar_spec = pl.BlockSpec(memory_space=pltpu.MemorySpace.SMEM)
    one_minus = jnp.asarray([1.0 - decay_rate], dtype=jnp.float32)

    feat2 = pl.pallas_call(
        _ema_kernel,
        out_shape=jax.ShapeDtypeStruct((rows, lanes), features.dtype),
        grid=grid,
        in_specs=[scalar_spec, blk, blk],
        out_specs=blk,
        # In-place update of the (padded) features operand at the HBM level.
        # NOTE: callers must treat the old `features` value as consumed.
        input_output_aliases={2: 0},
        compiler_params=pltpu.CompilerParams(
            dimension_semantics=("parallel",),   # v7x: shard rows across 2 TCs
            vmem_limit_bytes=vmem_limit,
        ),
        cost_estimate=pl.CostEstimate(
            flops=3 * rows * lanes,
            transcendentals=0,
            bytes_accessed=rows * lanes * (x_item + 2 * f_item),
        ),
    )(one_minus, x2, f2)

    feat_new = feat2.reshape(-1)
    if padded_n != n:
        feat_new = feat_new[:n]
    return feat_new.reshape(orig_shape)


def cbp_linear_forward(x, features, decay_rate=0.0, use_pallas=None):
    """CBPLinear.forward + the forward-time `log_features` hook.

    Args:
      x:          activations; last dim is the hidden size (in_layer.out_features).
      features:   previously logged features (same shape as x), or None.
      decay_rate: CBPLinear hyperparameter (python float).
      use_pallas: None = auto (use the kernel only for buffers >= ~1 MiB,
                  where it pays off); True/False force.
    Returns:
      (out, features_new): out is exactly `x` (identity forward, never
      re-materialized); features_new is the updated logged-features buffer.
    """
    decay_rate = float(decay_rate)

    # forward() is the identity; only the hook does any work.
    if decay_rate == 0.0:
        return x, x                                      # features <- input
    if features is None:
        return x, ((1.0 - decay_rate) * x).astype(x.dtype)
    if features.shape != x.shape:
        # nenvs/steps grouping branch of log_features (rare; plain jnp, not Pallas).
        if x.shape[0] < features.shape[0]:
            a = (1.0 - decay_rate) * x
            b = decay_rate * features
        else:
            a = decay_rate * features
            b = (1.0 - decay_rate) * x
        nenvs = a.shape[0]
        steps = b.shape[0] // nenvs
        b_grouped = b.reshape((nenvs, steps) + b.shape[1:])
        feat_new = (a[:, None] + b_grouped).reshape(b.shape)
        return x, feat_new

    feat_bytes = features.size * jnp.dtype(features.dtype).itemsize
    if use_pallas is None:
        use_pallas = feat_bytes >= _MIN_PALLAS_BYTES
    if not use_pallas:
        # Tiny buffers (typical CBPLinear [batch, hidden]): fused XLA EMA beats
        # the fixed pallas_call / DMA-setup overhead.
        feat_new = (decay_rate * features.astype(jnp.float32)
                    + (1.0 - decay_rate) * x.astype(jnp.float32))
        return x, feat_new.astype(features.dtype)

    return x, _ema_pallas(x, features, decay_rate)


if __name__ == "__main__":
    # Deterministic synthetic inputs (no checkpoints).  The module's util/ages/
    # bound/in_layer/out_layer state is only read by the backward-hook reinit
    # path, which forward never touches, so it is not constructed here.
    key = jax.random.PRNGKey(0)
    k_x, k_feat, k_xs, k_fs = jax.random.split(key, 4)

    B, H = 16, 32                       # batch, in_layer.out_features (hidden)
    dtype = jnp.float32

    x = jax.random.normal(k_x, (B, H), dtype)
    features_prev = jax.random.normal(k_feat, (B, H), dtype)
    decay = 0.9

    # Case 1: module default decay_rate = 0 -> identity, features <- x, no kernel.
    out0, feat0 = cbp_linear_forward(x, features_prev, decay_rate=0.0)
    assert jnp.array_equal(out0, x) and jnp.array_equal(feat0, x)

    # Case 2: first call (features is None) -> features <- (1 - decay) * x.
    out1, feat1 = cbp_linear_forward(x, None, decay_rate=decay)
    assert jnp.allclose(feat1, (1.0 - decay) * x, atol=1e-6, rtol=1e-6)

    # Reference EMA, materialized before any aliased kernel call.
    ref_feat = jax.block_until_ready(decay * features_prev + (1.0 - decay) * x)

    # Case 3: auto path -> tiny buffer uses the fused jnp EMA (launch bypass).
    out2, feat2 = cbp_linear_forward(x, features_prev, decay_rate=decay)
    assert jnp.array_equal(out2, x)
    assert jnp.allclose(feat2, ref_feat, atol=1e-6, rtol=1e-6)

    # Case 4: Pallas EMA kernel (forced), lane-dense layout (16*32 = 512 elems).
    out3, feat3 = cbp_linear_forward(x, features_prev, decay_rate=decay,
                                     use_pallas=True)
    out3 = jax.block_until_ready(out3)
    feat3 = jax.block_until_ready(feat3)
    assert out3.shape == x.shape and out3.dtype == x.dtype
    assert jnp.array_equal(out3, x)                      # identity forward
    assert feat3.shape == features_prev.shape
    assert feat3.dtype == features_prev.dtype
    assert jnp.allclose(feat3, ref_feat, atol=1e-6, rtol=1e-6)

    # Case 5: Pallas EMA kernel with a non-128-multiple element count
    # (2*3*20 = 120 elements) -> exercises the pad-to-lane-dense fallback.
    xs = jax.random.normal(k_xs, (2, 3, 20), dtype)
    fs = jax.random.normal(k_fs, (2, 3, 20), dtype)
    ref_s = jax.block_until_ready(decay * fs + (1.0 - decay) * xs)
    _, feat_s = cbp_linear_forward(xs, fs, decay_rate=decay, use_pallas=True)
    feat_s = jax.block_until_ready(feat_s)
    assert feat_s.shape == fs.shape
    assert jnp.allclose(feat_s, ref_s, atol=1e-6, rtol=1e-6)

    # Case 6: mismatched-shape (nenvs/steps grouping) hook branch, plain jnp.
    x_small = jax.random.normal(k_xs, (2, H), dtype)
    feats_big = jax.random.normal(k_fs, (8, H), dtype)
    _, feat_g = cbp_linear_forward(x_small, feats_big, decay_rate=decay)
    assert feat_g.shape == feats_big.shape

    print("KERNEL_OK")
</pallas_src>

<mosaic_0001>
module attributes {stable_mosaic.version = 11 : i64} {
  func.func @_ema_kernel(%arg0: i32, %arg1: memref<1xf32, #tpu.memory_space<smem>>, %arg2: memref<1x512xf32, #tpu.memory_space<vmem>>, %arg3: memref<1x512xf32, #tpu.memory_space<vmem>>, %arg4: memref<1x512xf32, #tpu.memory_space<vmem>>) attributes {dimension_semantics = [#tpu.dimension_semantics<parallel>], iteration_bounds = array<i64: 1>, scalar_prefetch = 0 : i64, scratch_operands = 0 : i64, tpu.core_type = #tpu.core_type<tc>, window_params = [{transform_indices = @transform_0, window_bounds = array<i64: 1>}, {transform_indices = @transform_1, window_bounds = array<i64: 1, 512>}, {transform_indices = @transform_2, window_bounds = array<i64: 1, 512>}, {transform_indices = @transform_3, window_bounds = array<i64: 1, 512>}]} {
    %c0 = arith.constant 0 : index
    %0 = memref.load %arg1[%c0] : memref<1xf32, #tpu.memory_space<smem>>
    %c0_0 = arith.constant 0 : index
    %c0_1 = arith.constant 0 : index
    %1 = vector.load %arg2[%c0_0, %c0_1] : memref<1x512xf32, #tpu.memory_space<vmem>>, vector<1x512xf32>
    %c0_2 = arith.constant 0 : index
    %c0_3 = arith.constant 0 : index
    %2 = vector.load %arg3[%c0_2, %c0_3] : memref<1x512xf32, #tpu.memory_space<vmem>>, vector<1x512xf32>
    %3 = arith.subf %1, %2 : vector<1x512xf32>
    %4 = vector.broadcast %0 : f32 to vector<1x512xf32>
    %5 = arith.mulf %4, %3 : vector<1x512xf32>
    %6 = arith.addf %2, %5 : vector<1x512xf32>
    %c0_4 = arith.constant 0 : index
    %c0_5 = arith.constant 0 : index
    %7 = vector.load %arg4[%c0_4, %c0_5] : memref<1x512xf32, #tpu.memory_space<vmem>>, vector<1x512xf32>
    tpu.vector_store %arg4[%c0_4, %c0_5], %6 {strides = array<i32>} : memref<1x512xf32, #tpu.memory_space<vmem>>, vector<1x512xf32>,
    return
  }
  func.func @transform_0(%arg0: i32) -> i32 {
    %c0_i32 = arith.constant 0 : i32
    %c0_i32_0 = arith.constant 0 : i32
    return %c0_i32 : i32
  }
  func.func @transform_1(%arg0: i32) -> (i32, i32) {
    %c0_i32 = arith.constant 0 : i32
    %c0_i32_0 = arith.constant 0 : i32
    return %arg0, %c0_i32 : i32, i32
  }
  func.func @transform_2(%arg0: i32) -> (i32, i32) {
    %c0_i32 = arith.constant 0 : i32
    %c0_i32_0 = arith.constant 0 : i32
    return %arg0, %c0_i32 : i32, i32
  }
  func.func @transform_3(%arg0: i32) -> (i32, i32) {
    %c0_i32 = arith.constant 0 : i32
    %c0_i32_0 = arith.constant 0 : i32
    return %arg0, %c0_i32 : i32, i32
  }
}

</mosaic_0001>

<bundles_post_ra>
// kernel: tpu_custom_call.1
= control target key start
LH: loop header
LB: loop body
LE: loop exit
PB: predicated region body
PF: predicated region fallthrough
CT: control target
= control target key end

     0   :  { %9 = vsyncpa [#allocation4], 0  ;;  %s157_s0 = inlined_call_operand.<no memory space> [shape: f32[1], index: 0, kind: input, shape index: {}]   ;;  %s158_s1 = inlined_call_operand.vmem [shape: f32[1,512], index: 1, kind: input, shape index: {}]   ;;  %s159_s2 = inlined_call_operand.hbm [shape: f32[1,512], index: 2, kind: input, shape index: {}, may-alias: {2,3}]   ;;  %s160_s3 = inlined_call_operand.hbm [shape: f32[1,512], index: 3, kind: output, shape index: {}, may-alias: {2,3}]  }
   0x1   :  { %10 = vsyncpa [#allocation5], 0  ;;  %s105_s12 = smov [#allocation3]   ;;  %s57_s16 = scalar_lea.hbm %s159_s2, 64 }
   0x2   :  { %s21_s13 = sshll.u32 %s105_s12, 4  ;;  %p58_p0 = scmp.ne.s32.totalorder %s159_s2, %s57_s16  ;;  %s22_s13 = int_to_ptr.vmem [resolvable:$true] %s21_s13 }
   0x3   :  { %p61_p1 = scmp.lt.u32.totalorder %s57_s16, %s159_s2 }
   0x5   :  { %p63_p2 = pnand %p61_p1, %p58_p0 }
   0x7   :  { %66 = shalt.err (!%p63_p2)
}
   0x8   :  { %s67_s21 = scalar_lea.vmem %s22_s13, 64  ;;  %p72_p4 = scmp.lt.s32.totalorder %s22_s13, %s22_s13 }
   0x9   :  { %p68_p3 = scmp.ne.s32.totalorder %s22_s13, %s67_s21  ;;  %p73_p5 = scmp.lt.s32.totalorder %s67_s21, %s67_s21 }
   0xb   :  { %p74_p6 = por %p73_p5, %p72_p4 }
   0xd   :  { %p75_p7 = pnand %p74_p6, %p68_p3 }
   0xf   :  { %78 = shalt.err (!%p75_p7)
}
  0x10   :  { %24 = dma.hbm_to_vmem [thread:$0]  %s159_s2, 64, %s22_s13, [#allocation4]  }
  0x11   :  { %101 = dma.done.wait [#allocation4], 64  }
  0x12   :  { %102 = vsyncadd [#allocation4], 4294967232  ;;  %v29_v0 = vld [vmem:[%s158_s1] sm:$0xf]  ;;  %v32_v2 = vstv %s157_s0  ;;  %v35_v3 = vlaneseq  ;;  %s106_s28 = smov [#allocation6]  }
  0x13   :  { %v30_v1 = vld [vmem:[#allocation3] sm:$0xf]  ;;  %s46_s29 = sshll.u32 %s106_s28, 4  ;;  %s47_s29 = int_to_ptr.vmem [resolvable:$true] %s46_s29 }
  0x14   :  { %v31_v4 = vsub.f32 %v29_v0, %v30_v1  ;;  %vm37_vm0 = vcmp.lt.s32.totalorder %v35_v3, 512  ;;  %s79_s2 = scalar_lea.vmem %s47_s29, 64  ;;  %p84_p9 = scmp.lt.s32.totalorder %s47_s29, %s47_s29 }
  0x15   :  { %p80_p8 = scmp.ne.s32.totalorder %s47_s29, %s79_s2  ;;  %p85_p10 = scmp.lt.s32.totalorder %s79_s2, %s79_s2 }
  0x16   :  { %v33_v5 = vmul.f32 %v32_v2, %v31_v4 }
  0x17   :  { %p86_p11 = por %p85_p10, %p84_p9 }
  0x18   :  { %v34_v6 = vadd.f32 %v33_v5, %v30_v1 }
  0x19   :  { %p87_p12 = pnand %p86_p11, %p80_p8 }
  0x1a   :  { %39 = vst.msk [vmem:[#allocation6] sm:$0xf] %vm37_vm0, %v34_v6 }
  0x1b   :  { %90 = shalt.err (!%p87_p12)
}
  0x1c   :  { %s91_s0 = scalar_lea.hbm %s160_s3, 64 }
  0x1d   :  { %p92_p13 = scmp.ne.s32.totalorder %s160_s3, %s91_s0  ;;  %p95_p0 = scmp.lt.u32.totalorder %s91_s0, %s160_s3 }
  0x1f   :  { %p97_p1 = pnand %p95_p0, %p92_p13 }
  0x21   :  { %100 = shalt.err (!%p97_p1)
}
  0x22   :  { %49 = dma.vmem_to_hbm [thread:$0]  %s47_s29, 64, %s160_s3, [#allocation5]  }
  0x23   :  { %103 = dma.done.wait [#allocation5], 64  }
  0x24   :  { %104 = vsyncadd [#allocation5], 4294967232 }
  0x25   :  { %53 = vsyncpa [#allocation4], 1 }
  0x26   :  { %54 = vsyncpa [#allocation5], 1 }

</bundles_post_ra>
